<compile_context>
chip_gen: v7x
topology: tpu7x:2x2x1
jax: 0.10.0
libtpu: 0.0.40
codegen_flags: <defaults>
</compile_context>

<pallas_src>
import functools

import jax
import jax.numpy as jnp
from jax import lax
from jax.experimental import pallas as pl
from jax.experimental.pallas import tpu as pltpu


def _default_vmem_limit_bytes():
    # Generation-aware scoped-VMEM budget: ~40 MiB on v7x (64 MiB physical VMEM),
    # 64 MiB on v5e/v6e (128 MiB physical).
    try:
        cap = int(getattr(pltpu.get_tpu_info(), "vmem_capacity_bytes", 128 * 1024 * 1024))
    except Exception:
        cap = 128 * 1024 * 1024
    return min(64 * 1024 * 1024, max(32 * 1024 * 1024, (cap * 5) // 8))


_VMEM_LIMIT_BYTES = _default_vmem_limit_bytes()
_WANT_TN = 1024      # node tile (lane axis); these kernels are memory-bound, sweep 1024-2048
_WANT_TE = 256       # edge tile (lane axis of the gradient reduction); sweep {256, 512}


def _cp(dimension_semantics):
    return pltpu.CompilerParams(dimension_semantics=dimension_semantics,
                                vmem_limit_bytes=_VMEM_LIMIT_BYTES)


def _pick_tile(n, want, quantum):
    """Largest multiple of `quantum` that divides n and is <= want (else the full extent)."""
    if n <= quantum or n % quantum != 0:
        return n
    t = min(want, n)
    t -= t % quantum
    while t >= quantum and n % t != 0:
        t -= quantum
    return t if t >= quantum else n


def _recip(x, approx):
    # EUP approximate reciprocal on the bf16 path (free VLIW slot); exact divide on the f32
    # correctness path so the tight reference check stays tight.
    if approx:
        return pl.reciprocal(x, approx=True)
    return 1.0 / x


# erf via Abramowitz & Stegun 7.1.26 (|err| < 1.5e-7): only mul/add/recip/exp, so it lowers on
# VPU/EUP on every TPU generation.  Used for the exact (erf) GELU fused into the kernels.
_ERF_P = 0.3275911
_ERF_A1, _ERF_A2, _ERF_A3, _ERF_A4, _ERF_A5 = (
    0.254829592, -0.284496736, 1.421413741, -1.453152027, 1.061405429)


def _erf(z, approx):
    s = jnp.where(z >= 0.0, 1.0, -1.0)
    za = jnp.abs(z)
    t = _recip(1.0 + _ERF_P * za, approx)
    poly = ((((_ERF_A5 * t + _ERF_A4) * t + _ERF_A3) * t + _ERF_A2) * t + _ERF_A1) * t
    return s * (1.0 - poly * jnp.exp(-za * za))


def _gelu_exact(x, approx):
    return 0.5 * x * (1.0 + _erf(x * 0.7071067811865476, approx))


# ----------------------------------------------------------------------------- fc0 (lifting)

def _fc0_kernel(x_ref, w_ref, b_ref, o_ref, *, in_dim):
    # x: [Din, TN]   w: [C0, Din]   b: [C0, 1]   ->   o: [C0, TN]   (Din tiny -> VPU FMAs)
    x = x_ref[0]
    w = w_ref[...]
    acc = w[:, 0:1] * x[0:1, :]
    for i in range(1, in_dim):
        acc = acc + w[:, i:i + 1] * x[i:i + 1, :]
    o_ref[0] = acc + b_ref[...]


def fc0_apply(x_t, w, b):
    """Lifting layer, channels-first.  x_t: [B, Din, N] -> [B, C0, N]."""
    B, in_dim, N = x_t.shape
    C0 = w.shape[0]
    TN = _pick_tile(N, _WANT_TN, 128)
    kern = functools.partial(_fc0_kernel, in_dim=in_dim)
    return pl.pallas_call(
        kern,
        out_shape=jax.ShapeDtypeStruct((B, C0, N), jnp.float32),
        grid=(B, N // TN),
        in_specs=[
            pl.BlockSpec((1, in_dim, TN), lambda b_, n: (b_, 0, n)),
            pl.BlockSpec((C0, in_dim), lambda b_, n: (0, 0)),
            pl.BlockSpec((C0, 1), lambda b_, n: (0, 0)),
        ],
        out_specs=pl.BlockSpec((1, C0, TN), lambda b_, n: (b_, 0, n)),
        compiler_params=_cp(("parallel", "parallel")),
    )(x_t, w, b.reshape(C0, 1))


# ----------------------------------------------------------------------------- spectral encode

def _encode_kernel(h_ref, bcs_ref, nw_ref, wc_ref, ws_ref, fhc_ref, fhs_ref, acc_ref,
                   *, nmeasures, nmodes, cdt):
    nt = pl.program_id(1)

    @pl.when(nt == 0)
    def _():
        acc_ref[...] = jnp.zeros_like(acc_ref)

    K = nmodes
    WK = nmeasures * K
    h = h_ref[0].astype(cdt)                               # [Cin, TN]
    nw = nw_ref[0].astype(cdt)                             # [W, TN]    rho(x) dx
    bcs = bcs_ref[0]                                       # [2*W*K, TN] = [cos ; sin]  (cdt)
    # Weight the whole basis block in the compute dtype (no f32 up/down-cast passes).
    if nmeasures == 1:
        wb = bcs * nw
    else:
        pieces = [bcs[w * K:(w + 1) * K] * nw[w:w + 1] for w in range(nmeasures)]
        pieces += [bcs[WK + w * K:WK + (w + 1) * K] * nw[w:w + 1] for w in range(nmeasures)]
        wb = jnp.concatenate(pieces, axis=0)
    # One dot per node tile into a flat [Cin, 2*W*K] accumulator.
    dn = (((1,), (1,)), ((), ()))                          # contract the node (lane) axis
    acc_ref[...] += lax.dot_general(h, wb, dn, preferred_element_type=jnp.float32)

    @pl.when(nt == pl.num_programs(1) - 1)
    def _():
        # Mode mixing (Cin*Cout*K MACs, negligible next to the N-sized encode/decode), once
        # per (layer, batch):  f_c = xc.Wc - xs.Ws ;  f_s = xs.Wc + xc.Ws
        fc_list, fs_list = [], []
        for w in range(nmeasures):
            xc = acc_ref[:, w * K:(w + 1) * K]             # [Cin, K]   x_c_hat
            xs = -acc_ref[:, WK + w * K:WK + (w + 1) * K]  #            x_s_hat (minus sign)
            wcw = wc_ref[w]                                # [Cin, Cout, K]
            wsw = ws_ref[w]
            fc_list.append(jnp.sum(xc[:, None, :] * wcw - xs[:, None, :] * wsw, axis=0))
            fs_list.append(jnp.sum(xs[:, None, :] * wcw + xc[:, None, :] * wsw, axis=0))
        fhc_ref[0] = fc_list[0] if nmeasures == 1 else jnp.concatenate(fc_list, axis=-1)
        fhs_ref[0] = fs_list[0] if nmeasures == 1 else jnp.concatenate(fs_list, axis=-1)


def spectral_encode(h, bases_cs, nw_t, wc_t, ws_t, cdt):
    """h: [B,Cin,N] f32; bases_cs: [B,2*W*K,N] cdt; nw_t: [B,W,N] f32; wc/ws: [W,Cin,Cout,K]
       -> (f_c_hat, f_s_hat): [B, Cout, W*K] f32 (column order w*K + k, matching bases rows)."""
    B, Cin, N = h.shape
    W, _, Cout, K = wc_t.shape
    WK2 = 2 * W * K
    TN = _pick_tile(N, _WANT_TN, 128)
    kern = functools.partial(_encode_kernel, nmeasures=W, nmodes=K, cdt=cdt)
    # TODO(synk): for small/odd batch on v7x, split the node-reduction across the 2 cores.
    return pl.pallas_call(
        kern,
        out_shape=(jax.ShapeDtypeStruct((B, Cout, W * K), jnp.float32),
                   jax.ShapeDtypeStruct((B, Cout, W * K), jnp.float32)),
        grid=(B, N // TN),
        in_specs=[
            pl.BlockSpec((1, Cin, TN), lambda b, n: (b, 0, n)),
            pl.BlockSpec((1, WK2, TN), lambda b, n: (b, 0, n)),
            pl.BlockSpec((1, W, TN), lambda b, n: (b, 0, n)),
            pl.BlockSpec((W, Cin, Cout, K), lambda b, n: (0, 0, 0, 0)),
            pl.BlockSpec((W, Cin, Cout, K), lambda b, n: (0, 0, 0, 0)),
        ],
        out_specs=(pl.BlockSpec((1, Cout, W * K), lambda b, n: (b, 0, 0)),
                   pl.BlockSpec((1, Cout, W * K), lambda b, n: (b, 0, 0))),
        scratch_shapes=[pltpu.VMEM((Cin, WK2), jnp.float32)],
        compiler_params=_cp(("parallel", "arbitrary")),
    )(h, bases_cs, nw_t, wc_t, ws_t)


# ----------------------------------------------------------------------------- gradient -> x3

def _gradient_x3_kernel(h_ref, tgt_ref, src_ref, ew_ref, gw_ref, o_ref, acc_ref,
                        *, ndims, approx, cdt):
    et = pl.program_id(1)

    @pl.when(et == 0)
    def _():
        acc_ref[...] = jnp.zeros_like(acc_ref)

    h = h_ref[0].astype(cdt)                               # [Cin, N]  gather-target field
    n = h.shape[-1]
    tgt = tgt_ref[0]                                       # [1, TE] int32 (lane-dense)
    src = src_ref[0]
    te = tgt.shape[-1]
    one = jnp.ones((), cdt)
    zero = jnp.zeros((), cdt)
    # One-hots built directly in the compute dtype, node id on the sublane axis -> the gather
    # matmul below is in natural [M,K]x[K,N] MXU form.
    ids = lax.broadcasted_iota(jnp.int32, (n, te), 0)      # [N, TE]
    oh_tgt = jnp.where(ids == tgt, one, zero)
    oh_src = jnp.where(ids == src, one, zero)
    # Edge gather: df[c, e] = h[c, src[e]] - h[c, tgt[e]]  -- one MXU matmul.
    df = jnp.dot(h, oh_src - oh_tgt, preferred_element_type=jnp.float32).astype(cdt)  # [Cin,TE]
    # Messages (d-major rows): msg[d*Cin + c, e] = df[c, e] * ew[d, e]   (cheap VPU multiply).
    ew = ew_ref[0].astype(cdt)                             # [D, TE]
    msg = jnp.concatenate([df * ew[d:d + 1, :] for d in range(ndims)], axis=0)  # [D*Cin, TE]
    # Scatter-add over target nodes: ONE matmul, contraction over the edge axis (q.k^T style).
    dn = (((1,), (1,)), ((), ()))
    acc_ref[...] += lax.dot_general(msg, oh_tgt, dn, preferred_element_type=jnp.float32)

    @pl.when(et == pl.num_programs(1) - 1)
    def _():
        # softsign + gW conv fused into the finalize: no [B, D*Cin, N] HBM round-trip, and the
        # softsign sees the full-precision f32 accumulator.
        g = acc_ref[...]                                   # [D*Cin, N] f32
        ss = (g * _recip(1.0 + jnp.abs(g), approx)).astype(cdt)
        o_ref[0] = jnp.dot(gw_ref[...].astype(cdt), ss,
                           preferred_element_type=jnp.float32).astype(o_ref.dtype)


def gradient_x3(h, tgt, src, ew_t, gw_dm, cdt, approx):
    """h: [B,Cin,N] f32; tgt/src: [B,1,E] int32; ew_t: [B,D,E] f32; gw_dm: [Cout, D*Cin]
       (d-major columns) -> x3 = gW.softsign(grad): [B, Cout, N] in the compute dtype.
       E is the pipelined reduction axis; the [Cin,N] field and [D*Cin,N] accumulator stay
       resident per batch."""
    B, Cin, N = h.shape
    _, D, E = ew_t.shape
    Cout = gw_dm.shape[0]
    TE = _pick_tile(E, _WANT_TE, 128)
    kern = functools.partial(_gradient_x3_kernel, ndims=D, approx=approx, cdt=cdt)
    # TODO(synk): for very large N (>~12-16K on v7x) add an inner node-tile axis so the
    # resident h/acc footprint fits the 64 MiB VMEM; fine at the current sizes.
    return pl.pallas_call(
        kern,
        out_shape=jax.ShapeDtypeStruct((B, Cout, N), cdt),
        grid=(B, E // TE),
        in_specs=[
            pl.BlockSpec((1, Cin, N), lambda b, e: (b, 0, 0)),
            pl.BlockSpec((1, 1, TE), lambda b, e: (b, 0, e)),
            pl.BlockSpec((1, 1, TE), lambda b, e: (b, 0, e)),
            pl.BlockSpec((1, D, TE), lambda b, e: (b, 0, e)),
            pl.BlockSpec((Cout, D * Cin), lambda b, e: (0, 0)),
        ],
        out_specs=pl.BlockSpec((1, Cout, N), lambda b, e: (b, 0, 0)),
        scratch_shapes=[pltpu.VMEM((D * Cin, N), jnp.float32)],
        compiler_params=_cp(("parallel", "arbitrary")),
    )(h, tgt, src, ew_t, gw_dm)


# ----------------------------------------------------------------------------- fused layer

def _fused_layer_kernel(h_ref, bcs_ref, fl_ref, x3_ref, ww_ref, b_ref, o_ref,
                        *, apply_act, approx, cdt):
    h = h_ref[0].astype(cdt)                               # [Cin, TN]
    # x2 = W h   and   x1 = [2 f_c | -2 f_s] . [cos ; sin]   as two stacked matmuls.
    acc = jnp.dot(ww_ref[...].astype(cdt), h, preferred_element_type=jnp.float32)
    acc = acc + jnp.dot(fl_ref[0].astype(cdt), bcs_ref[0], preferred_element_type=jnp.float32)
    # x3 (gradient path) was already computed in the gradient kernel; biases folded into b.
    acc = acc + b_ref[...] + x3_ref[0].astype(jnp.float32)
    if apply_act:
        acc = _gelu_exact(acc, approx)                     # exact-erf GELU, fused in-kernel
    o_ref[0] = acc


def fused_layer(h, bases_cs, fh_lhs, x3, w_w, bias, *, apply_act, cdt, approx):
    """One Fourier layer's decode + W conv + x3 add + GELU, fused and lane-dense."""
    B, Cin, N = h.shape
    Cout = w_w.shape[0]
    WK2 = bases_cs.shape[1]
    TN = _pick_tile(N, _WANT_TN, 128)
    kern = functools.partial(_fused_layer_kernel, apply_act=apply_act, approx=approx, cdt=cdt)
    return pl.pallas_call(
        kern,
        out_shape=jax.ShapeDtypeStruct((B, Cout, N), jnp.float32),
        grid=(B, N // TN),
        in_specs=[
            pl.BlockSpec((1, Cin, TN), lambda b, n: (b, 0, n)),
            pl.BlockSpec((1, WK2, TN), lambda b, n: (b, 0, n)),
            pl.BlockSpec((1, Cout, WK2), lambda b, n: (b, 0, 0)),
            pl.BlockSpec((1, Cout, TN), lambda b, n: (b, 0, n)),
            pl.BlockSpec((Cout, Cin), lambda b, n: (0, 0)),
            pl.BlockSpec((Cout, 1), lambda b, n: (0, 0)),
        ],
        out_specs=pl.BlockSpec((1, Cout, TN), lambda b, n: (b, 0, n)),
        compiler_params=_cp(("parallel", "parallel")),
    )(h, bases_cs, fh_lhs, x3, w_w, bias.reshape(Cout, 1))


# ----------------------------------------------------------------------------- fc head

def _fc_head_kernel(h_ref, w1_ref, b1_ref, w2_ref, b2_ref, o_ref, *, approx, cdt):
    h = h_ref[0].astype(cdt)                               # [Clast, TN]
    z = jnp.dot(w1_ref[...].astype(cdt), h, preferred_element_type=jnp.float32) + b1_ref[...]
    z = _gelu_exact(z, approx)
    o_ref[0] = jnp.dot(w2_ref[...].astype(cdt), z.astype(cdt),
                       preferred_element_type=jnp.float32) + b2_ref[...]


def _fc2_only_kernel(h_ref, w2_ref, b2_ref, o_ref, *, cdt):
    h = h_ref[0].astype(cdt)
    o_ref[0] = jnp.dot(w2_ref[...].astype(cdt), h,
                       preferred_element_type=jnp.float32) + b2_ref[...]


def fc_head(h, params, cdt, approx):
    """Projection head, channels-first (lane-dense).  h: [B, Clast, N] -> [B, out_dim, N]."""
    B, Clast, N = h.shape
    TN = _pick_tile(N, _WANT_TN, 128)
    fc2_w, fc2_b = params['fc2_w'], params['fc2_b']
    out_dim = fc2_w.shape[0]
    if params['fc_dim'] > 0:
        fc1_w, fc1_b = params['fc1_w'], params['fc1_b']
        fcd = fc1_w.shape[0]
        return pl.pallas_call(
            functools.partial(_fc_head_kernel, approx=approx, cdt=cdt),
            out_shape=jax.ShapeDtypeStruct((B, out_dim, N), jnp.float32),
            grid=(B, N // TN),
            in_specs=[
                pl.BlockSpec((1, Clast, TN), lambda b, n: (b, 0, n)),
                pl.BlockSpec((fcd, Clast), lambda b, n: (0, 0)),
                pl.BlockSpec((fcd, 1), lambda b, n: (0, 0)),
                pl.BlockSpec((out_dim, fcd), lambda b, n: (0, 0)),
                pl.BlockSpec((out_dim, 1), lambda b, n: (0, 0)),
            ],
            out_specs=pl.BlockSpec((1, out_dim, TN), lambda b, n: (b, 0, n)),
            compiler_params=_cp(("parallel", "parallel")),
        )(h, fc1_w, fc1_b.reshape(fcd, 1), fc2_w, fc2_b.reshape(out_dim, 1))
    return pl.pallas_call(
        functools.partial(_fc2_only_kernel, cdt=cdt),
        out_shape=jax.ShapeDtypeStruct((B, out_dim, N), jnp.float32),
        grid=(B, N // TN),
        in_specs=[
            pl.BlockSpec((1, Clast, TN), lambda b, n: (b, 0, n)),
            pl.BlockSpec((out_dim, Clast), lambda b, n: (0, 0)),
            pl.BlockSpec((out_dim, 1), lambda b, n: (0, 0)),
        ],
        out_specs=pl.BlockSpec((1, out_dim, TN), lambda b, n: (b, 0, n)),
        compiler_params=_cp(("parallel", "parallel")),
    )(h, fc2_w, fc2_b.reshape(out_dim, 1))


# ----------------------------------------------------------------------------- parameters

def init_params(key, *, ndims, nmodes, nmeasures, layers, fc_dim, in_dim, out_dim):
    keys = iter(jax.random.split(key, 64))
    p = {'layers': list(layers), 'fc_dim': fc_dim}
    p['modes'] = jax.random.normal(next(keys), (nmodes, ndims, nmeasures), jnp.float32)
    p['sp_L'] = jnp.ones((ndims, nmeasures), jnp.float32)

    def linear_init(k, fan_in, fan_out):
        k1, k2 = jax.random.split(k)
        bound = 1.0 / (fan_in ** 0.5)
        w = jax.random.uniform(k1, (fan_out, fan_in), jnp.float32, -bound, bound)
        b = jax.random.uniform(k2, (fan_out,), jnp.float32, -bound, bound)
        return w, b

    p['fc0_w'], p['fc0_b'] = linear_init(next(keys), in_dim, layers[0])
    p['sp_wc'], p['sp_ws'], p['sp_w0'] = [], [], []
    p['w_w'], p['w_b'], p['gw_w'], p['gw_b'] = [], [], [], []
    for cin, cout in zip(layers, layers[1:]):
        scale = 1.0 / (cin * cout)
        p['sp_wc'].append(scale * jax.random.uniform(next(keys), (cin, cout, nmodes, nmeasures), jnp.float32))
        p['sp_ws'].append(scale * jax.random.uniform(next(keys), (cin, cout, nmodes, nmeasures), jnp.float32))
        # sp_w0 multiplies bases_0 which is identically zero in the reference (kept for parity).
        p['sp_w0'].append(scale * jax.random.uniform(next(keys), (cin, cout, 1, nmeasures), jnp.float32))
        w, b = linear_init(next(keys), cin, cout)
        p['w_w'].append(w[:, :, None]); p['w_b'].append(b)
        gw, gb = linear_init(next(keys), ndims * cin, cout)
        p['gw_w'].append(gw[:, :, None]); p['gw_b'].append(gb)
    if fc_dim > 0:
        p['fc1_w'], p['fc1_b'] = linear_init(next(keys), layers[-1], fc_dim)
        p['fc2_w'], p['fc2_b'] = linear_init(next(keys), fc_dim, out_dim)
    else:
        p['fc2_w'], p['fc2_b'] = linear_init(next(keys), layers[-1], out_dim)
    return p


# ----------------------------------------------------------------------------- forward (Pallas)

def pcno_forward(params, x, aux, compute_dtype=jnp.bfloat16):
    # TODO(synk): node_mask is unused here (matches the reference, which folds masking into
    # node_weights); the zero-valued bases_0 / sp_w0 term is omitted since it is exactly 0.
    node_mask, nodes, node_weights, directed_edges, edge_gradient_weights = aux
    B, N, _ = x.shape
    D = nodes.shape[-1]
    approx = jnp.dtype(compute_dtype) != jnp.dtype(jnp.float32)

    # Fourier bases: ONE lane-dense stacked stream [cos ; sin] of shape [B, 2*W*K, N] in the
    # compute dtype, shared by the encode and decode kernels.
    modes_eff = params['modes'] * params['sp_L']                   # [K, D, W]
    K, _, W = modes_eff.shape
    theta = jnp.einsum('bxd,kdw->bwkx', nodes, modes_eff,
                       precision=jax.lax.Precision.HIGHEST).reshape(B, W * K, N)
    bases_cs = jnp.concatenate([jnp.cos(theta), jnp.sin(theta)], axis=1).astype(compute_dtype)
    nw_t = jnp.transpose(node_weights, (0, 2, 1))                  # [B, W, N]  (rho dx)

    # Edge streams, lane-dense (edge index on the 128-lane axis).
    tgt = directed_edges[..., 0].astype(jnp.int32)[:, None, :]     # [B, 1, E]
    src = directed_edges[..., 1].astype(jnp.int32)[:, None, :]
    ew_t = jnp.transpose(edge_gradient_weights, (0, 2, 1))         # [B, D, E]

    h = fc0_apply(jnp.transpose(x, (0, 2, 1)), params['fc0_w'], params['fc0_b'])  # [B, C0, N]

    nlayers = len(params['w_w'])
    for i in range(nlayers):
        cin = h.shape[1]
        cout = params['w_w'][i].shape[0]
        wc_t = jnp.transpose(params['sp_wc'][i], (3, 0, 1, 2))     # [W, Cin, Cout, K]
        ws_t = jnp.transpose(params['sp_ws'][i], (3, 0, 1, 2))
        fhc, fhs = spectral_encode(h, bases_cs, nw_t, wc_t, ws_t, compute_dtype)  # [B,Cout,WK]
        fh_lhs = jnp.concatenate([2.0 * fhc, -2.0 * fhs], axis=-1)  # decode lhs [B, Cout, 2WK]
        # Permute gW columns from torch's c-major (c*D + d) to the kernel's d-major (d*Cin + c).
        gw = params['gw_w'][i][:, :, 0]                            # [Cout, Cin*D]
        gw_dm = jnp.transpose(gw.reshape(cout, cin, D), (0, 2, 1)).reshape(cout, D * cin)
        x3 = gradient_x3(h, tgt, src, ew_t, gw_dm, compute_dtype, approx)  # [B, Cout, N]
        bias = params['w_b'][i] + params['gw_b'][i]                # W-conv + gW-conv biases
        h = fused_layer(h, bases_cs, fh_lhs, x3, params['w_w'][i][:, :, 0], bias,
                        apply_act=(i != nlayers - 1), cdt=compute_dtype, approx=approx)
    out = fc_head(h, params, compute_dtype, approx)                # [B, out_dim, N]
    return jnp.transpose(out, (0, 2, 1))


# ----------------------------------------------------------------------------- pure-JAX reference

def pcno_reference(params, x, aux):
    node_mask, nodes, node_weights, directed_edges, edge_gradient_weights = aux
    with jax.default_matmul_precision("float32"):
        modes = params['modes'] * params['sp_L']
        temp = jnp.einsum('bxd,kdw->bxkw', nodes, modes)
        bases_c, bases_s = jnp.cos(temp), jnp.sin(temp)
        B, N, K, W = temp.shape
        bases_0 = jnp.zeros((B, N, 1, W), temp.dtype)
        wbases_c = jnp.einsum('bxkw,bxw->bxkw', bases_c, node_weights)
        wbases_s = jnp.einsum('bxkw,bxw->bxkw', bases_s, node_weights)
        wbases_0 = jnp.einsum('bxkw,bxw->bxkw', bases_0, node_weights)

        h = x @ params['fc0_w'].T + params['fc0_b']
        h = jnp.transpose(h, (0, 2, 1))
        nlayers = len(params['w_w'])
        for i in range(nlayers):
            xc = jnp.einsum('bix,bxkw->bikw', h, wbases_c)
            xs = -jnp.einsum('bix,bxkw->bikw', h, wbases_s)
            x0 = jnp.einsum('bix,bxkw->bikw', h, wbases_0)
            wc, ws, w0 = params['sp_wc'][i], params['sp_ws'][i], params['sp_w0'][i]
            fc = jnp.einsum('bikw,iokw->bokw', xc, wc) - jnp.einsum('bikw,iokw->bokw', xs, ws)
            fs = jnp.einsum('bikw,iokw->bokw', xs, wc) + jnp.einsum('bikw,iokw->bokw', xc, ws)
            f0 = jnp.einsum('bikw,iokw->bokw', x0, w0)
            x1 = jnp.einsum('bokw,bxkw->box', f0, bases_0) \
                + 2 * jnp.einsum('bokw,bxkw->box', fc, bases_c) \
                - 2 * jnp.einsum('bokw,bxkw->box', fs, bases_s)
            x2 = jnp.einsum('oi,bin->bon', params['w_w'][i][:, :, 0], h) + params['w_b'][i][None, :, None]
            f = jnp.transpose(h, (0, 2, 1))
            tgt = directed_edges[..., 0]
            src = directed_edges[..., 1]
            fsrc = jnp.take_along_axis(f, src[..., None], axis=1)
            ftgt = jnp.take_along_axis(f, tgt[..., None], axis=1)
            message = jnp.einsum('bed,bec->becd', edge_gradient_weights, fsrc - ftgt)
            Bc, E, C, Dd = message.shape
            message = message.reshape(Bc, E, C * Dd)
            grad = jnp.zeros((Bc, N, C * Dd), message.dtype)
            grad = grad.at[jnp.arange(Bc)[:, None], tgt].add(message)
            grad = jnp.transpose(grad, (0, 2, 1))
            ss = grad / (1.0 + jnp.abs(grad))
            x3 = jnp.einsum('oi,bin->bon', params['gw_w'][i][:, :, 0], ss) + params['gw_b'][i][None, :, None]
            h = x1 + x2 + x3
            if i != nlayers - 1:
                h = jax.nn.gelu(h, approximate=False)
        h = jnp.transpose(h, (0, 2, 1))
        if params['fc_dim'] > 0:
            h = h @ params['fc1_w'].T + params['fc1_b']
            h = jax.nn.gelu(h, approximate=False)
        h = h @ params['fc2_w'].T + params['fc2_b']
        return h


# ----------------------------------------------------------------------------- main

if __name__ == "__main__":
    key = jax.random.PRNGKey(0)
    B, N, E = 2, 1024, 512
    ndims, nmodes, nmeasures = 2, 8, 1
    layers = [32, 32, 32]
    in_dim, out_dim, fc_dim = 3, 1, 32

    kp, kx, kn, kw, ke, kg = jax.random.split(key, 6)
    params = init_params(kp, ndims=ndims, nmodes=nmodes, nmeasures=nmeasures,
                         layers=layers, fc_dim=fc_dim, in_dim=in_dim, out_dim=out_dim)

    x = jax.random.normal(kx, (B, N, in_dim), jnp.float32)
    nodes = jax.random.uniform(kn, (B, N, ndims), jnp.float32)
    node_weights = jax.random.uniform(kw, (B, N, nmeasures), jnp.float32) / N
    directed_edges = jax.random.randint(ke, (B, E, 2), 0, N, jnp.int32)
    edge_gradient_weights = jax.random.normal(kg, (B, E, ndims), jnp.float32)
    node_mask = jnp.ones((B, N, 1), jnp.int32)   # unused by forward (matches reference)
    aux = (node_mask, nodes, node_weights, directed_edges, edge_gradient_weights)

    out = jax.block_until_ready(pcno_forward(params, x, aux, compute_dtype=jnp.bfloat16))
    out_f32 = jax.block_until_ready(pcno_forward(params, x, aux, compute_dtype=jnp.float32))
    ref = jax.block_until_ready(pcno_reference(params, x, aux))

    assert out.shape == (B, N, out_dim)
    assert bool(jnp.all(jnp.isfinite(out))) and bool(jnp.all(jnp.isfinite(out_f32)))
    scale = float(jnp.max(jnp.abs(ref)))
    err_f32 = float(jnp.max(jnp.abs(out_f32 - ref)))
    err_bf16 = float(jnp.max(jnp.abs(out - ref)))
    # f32-compute run (exact divides): tight check of the kernel math / layouts themselves.
    assert err_f32 <= 5e-3 * (1.0 + scale), f"f32 path err {err_f32} (scale {scale})"
    # bf16-MXU-operand run (EUP approx reciprocals): tolerance sized for bf16 rounding.
    assert err_bf16 <= 5e-2 * (1.0 + scale), f"bf16 path err {err_bf16} (scale {scale})"
    print("KERNEL_OK")
</pallas_src>

<mosaic_0001>
module attributes {stable_mosaic.version = 11 : i64} {
  func.func @_fc0_kernel(%arg0: i32, %arg1: i32, %arg2: memref<1x3x1024xf32, #tpu.memory_space<vmem>>, %arg3: memref<32x3xf32, #tpu.memory_space<vmem>>, %arg4: memref<32x1xf32, #tpu.memory_space<vmem>>, %arg5: memref<1x32x1024xf32, #tpu.memory_space<vmem>>) attributes {dimension_semantics = [#tpu.dimension_semantics<parallel>, #tpu.dimension_semantics<parallel>], iteration_bounds = array<i64: 2, 1>, scalar_prefetch = 0 : i64, scratch_operands = 0 : i64, tpu.core_type = #tpu.core_type<tc>, window_params = [{transform_indices = @transform_0, window_bounds = array<i64: 1, 3, 1024>}, {pipeline_mode = #tpu.pipeline_mode<synchronous>, transform_indices = @transform_1, window_bounds = array<i64: 32, 3>}, {pipeline_mode = #tpu.pipeline_mode<synchronous>, transform_indices = @transform_2, window_bounds = array<i64: 32, 1>}, {transform_indices = @transform_3, window_bounds = array<i64: 1, 32, 1024>}]} {
    %c0 = arith.constant 0 : index
    %c0_0 = arith.constant 0 : index
    %c0_1 = arith.constant 0 : index
    %0 = vector.load %arg2[%c0, %c0_0, %c0_1] : memref<1x3x1024xf32, #tpu.memory_space<vmem>>, vector<1x3x1024xf32>
    %1 = vector.shape_cast %0 : vector<1x3x1024xf32> to vector<3x1024xf32>
    %c0_2 = arith.constant 0 : index
    %c0_3 = arith.constant 0 : index
    %2 = vector.load %arg3[%c0_2, %c0_3] : memref<32x3xf32, #tpu.memory_space<vmem>>, vector<32x3xf32>
    %3 = vector.extract_strided_slice %2 {offsets = [0, 0], sizes = [32, 1], strides = [1, 1]} : vector<32x3xf32> to vector<32x1xf32>
    %4 = vector.extract_strided_slice %1 {offsets = [0, 0], sizes = [1, 1024], strides = [1, 1]} : vector<3x1024xf32> to vector<1x1024xf32>
    %5 = vector.broadcast %3 : vector<32x1xf32> to vector<32x1024xf32>
    %6 = vector.broadcast %4 : vector<1x1024xf32> to vector<32x1024xf32>
    %7 = arith.mulf %5, %6 : vector<32x1024xf32>
    %8 = vector.extract_strided_slice %2 {offsets = [0, 1], sizes = [32, 1], strides = [1, 1]} : vector<32x3xf32> to vector<32x1xf32>
    %9 = vector.extract_strided_slice %1 {offsets = [1, 0], sizes = [1, 1024], strides = [1, 1]} : vector<3x1024xf32> to vector<1x1024xf32>
    %10 = vector.broadcast %8 : vector<32x1xf32> to vector<32x1024xf32>
    %11 = vector.broadcast %9 : vector<1x1024xf32> to vector<32x1024xf32>
    %12 = arith.mulf %10, %11 : vector<32x1024xf32>
    %13 = arith.addf %7, %12 : vector<32x1024xf32>
    %14 = vector.extract_strided_slice %2 {offsets = [0, 2], sizes = [32, 1], strides = [1, 1]} : vector<32x3xf32> to vector<32x1xf32>
    %15 = vector.extract_strided_slice %1 {offsets = [2, 0], sizes = [1, 1024], strides = [1, 1]} : vector<3x1024xf32> to vector<1x1024xf32>
    %16 = vector.broadcast %14 : vector<32x1xf32> to vector<32x1024xf32>
    %17 = vector.broadcast %15 : vector<1x1024xf32> to vector<32x1024xf32>
    %18 = arith.mulf %16, %17 : vector<32x1024xf32>
    %19 = arith.addf %13, %18 : vector<32x1024xf32>
    %c0_4 = arith.constant 0 : index
    %c0_5 = arith.constant 0 : index
    %20 = vector.load %arg4[%c0_4, %c0_5] : memref<32x1xf32, #tpu.memory_space<vmem>>, vector<32x1xf32>
    %21 = vector.broadcast %20 : vector<32x1xf32> to vector<32x1024xf32>
    %22 = arith.addf %19, %21 : vector<32x1024xf32>
    %c0_6 = arith.constant 0 : index
    %c0_7 = arith.constant 0 : index
    %c0_8 = arith.constant 0 : index
    %23 = vector.load %arg5[%c0_6, %c0_7, %c0_8] : memref<1x32x1024xf32, #tpu.memory_space<vmem>>, vector<1x32x1024xf32>
    %24 = vector.shape_cast %23 : vector<1x32x1024xf32> to vector<32x1024xf32>
    %25 = vector.shape_cast %22 : vector<32x1024xf32> to vector<1x32x1024xf32>
    tpu.vector_store %arg5[%c0_6, %c0_7, %c0_8], %25 {strides = array<i32>} : memref<1x32x1024xf32, #tpu.memory_space<vmem>>, vector<1x32x1024xf32>,
    return
  }
  func.func @transform_0(%arg0: i32, %arg1: i32) -> (i32, i32, i32) {
    %c0_i32 = arith.constant 0 : i32
    %c0_i32_0 = arith.constant 0 : i32
    return %arg0, %c0_i32, %arg1 : i32, i32, i32
  }
  func.func @transform_1(%arg0: i32, %arg1: i32) -> (i32, i32) {
    %c0_i32 = arith.constant 0 : i32
    %c0_i32_0 = arith.constant 0 : i32
    %c0_i32_1 = arith.constant 0 : i32
    return %c0_i32, %c0_i32_0 : i32, i32
  }
  func.func @transform_2(%arg0: i32, %arg1: i32) -> (i32, i32) {
    %c0_i32 = arith.constant 0 : i32
    %c0_i32_0 = arith.constant 0 : i32
    %c0_i32_1 = arith.constant 0 : i32
    return %c0_i32, %c0_i32_0 : i32, i32
  }
  func.func @transform_3(%arg0: i32, %arg1: i32) -> (i32, i32, i32) {
    %c0_i32 = arith.constant 0 : i32
    %c0_i32_0 = arith.constant 0 : i32
    return %arg0, %c0_i32, %arg1 : i32, i32, i32
  }
}

</mosaic_0001>

<bundles_post_ra>
// kernel: tpu_custom_call.1
= control target key start
LH: loop header
LB: loop body
LE: loop exit
PB: predicated region body
PF: predicated region fallthrough
CT: control target
= control target key end

     0   :  { %8 = vsyncpa [#allocation3], 0  ;;  %s1813_s0 = inlined_call_operand.hbm [shape: f32[2,3,1024], index: 0, kind: input, shape index: {}]   ;;  %s1814_s1 = inlined_call_operand.hbm [shape: f32[32,3], index: 1, kind: input, shape index: {}]   ;;  %s1815_s2 = inlined_call_operand.hbm [shape: f32[32,1], index: 2, kind: input, shape index: {}]   ;;  %s1816_s3 = inlined_call_operand.hbm [shape: f32[2,32,1024], index: 3, kind: output, shape index: {}]  }
   0x1   :  { %10 = vsyncpa [#allocation3 + $0x1], 0 }
   0x2   :  { %11 = vsyncpa [#allocation6], 0 }
   0x3   :  { %12 = vsyncpa [#allocation4], 0 }
   0x4   :  { %14 = vsyncpa [#allocation4 + $0x1], 0  ;;  %s1209_s12 = smov 0   ;;  %s1211_s13 = smov 0  }
   0x5   :  { %s1213_s14 = smov 0   ;;  %s1215_s15 = smov 0  }
   0x6   :  { %s1217_s16 = smov 0   ;;  %s1219_s17 = smov 0  }
   0x7 LB: > { %s886_s18 = sadd.s32 4294967295, %s1176_s17   ;;  %s887_s19 = sadd.s32 4294967294, %s1176_s17   ;;  %s1176_s17 = sphi %s1219_s17, %s20_s17   ;;  %s1172_s16 = sphi %s1217_s16, %s1889_s16   ;;  %s1168_s15 = sphi %s1215_s15, %s1888_s15   ;;  %s1164_s14 = sphi %s1213_s14, %s1887_s14   ;;  %s1160_s13 = sphi %s1211_s13, %s1886_s13   ;;  %s1156_s12 = sphi %s1209_s12, %s1885_s12  }
   0x8   : > { %p54_p0 = scmp.ne.s32.totalorder %s1160_s13, %s1156_s12  ;;  %p1243_p1 = scmp.eq.s32.totalorder %s886_s18, 0 }
   0x9   : > { %p1247_p2 = scmp.eq.s32.totalorder %s886_s18, 1  ;;  %p128_p3 = scmp.eq.s32.totalorder %s887_s19, 1 }
   0xa   : > { %s1822_s20 = scalar_select %p1243_p1, 1, 0 }
   0xb   : > { %p1253_p4 = por %p1243_p1, %p54_p0  ;;  %p888_p5 = scmp.ge.s32.totalorder %s1176_s17, 1 }
   0xc   : > { %p1258_p6 = por %p128_p3, %p54_p0  ;;  %p135_p7 = scmp.lt.s32.totalorder %s1176_s17, 3 }
   0xd   : > { %s1824_s22 = scalar_select %p1253_p4, 1, 0 }
   0xe   : > { %s1825_s23 = scalar_select %p1258_p6, 1, 0 }
   0xf   : > { %p1263_p8 = pnand %p888_p5, %p135_p7  ;;  %s1178_s25 = smov [#allocation5]  }
  0x10   : > { %s147_s26 = sshll.u32 %s1178_s25, 4  ;;  %s1179_s28 = smov [#allocation7]   ;;  %s1267_s26 = int_to_ptr.vmem [resolvable:$true] %s147_s26 }
  0x11   : > { %p919_p9 = pneg %p1263_p8  ;;  %s160_s29 = sshll.u32 %s1179_s28, 4  ;;  %s1278_s29 = int_to_ptr.vmem [resolvable:$true] %s160_s29 }
  0x12   : > { %s1004_s5 = scalar_lea.hbm %s1814_s1, 512 }
  0x13   : > { %p1274_p11 = pnand %p919_p9, %p1243_p1  ;;  %p1005_p12 = scmp.ne.s32.totalorder %s1814_s1, %s1004_s5 }
  0x14   : > { %p1011_p5 = scmp.lt.u32.totalorder %s1004_s5, %s1814_s1 }
  0x15   : > { %p1006_p13 = pneg %p1274_p11 }
  0x17   : > { %p1007_p0 = pnand %p1006_p13, %p1005_p12 }
  0x19   : > { %p1008_p3 = pneg %p1007_p0 }
  0x1b   : > { %p1013_p7 = pnand %p1011_p5, %p1008_p3 }
  0x1d   : > { %1016 = shalt.err (!%p1013_p7)
}
  0x1e   : > { %s1017_s10 = scalar_lea.vmem %s1267_s26, 512  ;;  %p1025_p1 = scmp.lt.s32.totalorder %s1267_s26, %s1267_s26 }
  0x1f   : > { %p1018_p9 = scmp.ne.s32.totalorder %s1267_s26, %s1017_s10  ;;  %p1026_p12 = scmp.lt.s32.totalorder %s1017_s10, %s1017_s10 }
  0x21   : > { %p1020_p10 = pnand %p1018_p9, %p1006_p13  ;;  %p1027_p0 = por %p1026_p12, %p1025_p1 }
  0x23   : > { %p1021_p6 = pneg %p1020_p10 }
  0x25   : > { %p1028_p4 = pnand %p1027_p0, %p1021_p6 }
  0x27   : > { %1031 = shalt.err (!%p1028_p4)
}
  0x28   : > { %s1180_s11 = smov 128   ;;  %s1181_s18 = smov 8  }
  0x29   : > { %922 = dma.hbm_to_vmem [thread:$0]  (!%p1274_p11), %s1814_s1, 512, %s1267_s26, [#allocation6], %s1180_s11, %s1180_s11, %s1181_s18  }
  0x2a   : > { %s1032_s4 = scalar_lea.hbm %s1815_s2, 512 }
  0x2b   : > { %p1033_p1 = scmp.ne.s32.totalorder %s1815_s2, %s1032_s4  ;;  %p1039_p10 = scmp.lt.u32.totalorder %s1032_s4, %s1815_s2 }
  0x2d   : > { %p1035_p4 = pnand %p1033_p1, %p1006_p13 }
  0x2f   : > { %p1036_p6 = pneg %p1035_p4 }
  0x31   : > { %p1041_p3 = pnand %p1039_p10, %p1036_p6 }
  0x33   : > { %1044 = shalt.err (!%p1041_p3)
}
  0x34   : > { %s1045_s26 = scalar_lea.vmem %s1278_s29, 512  ;;  %p1053_p12 = scmp.lt.s32.totalorder %s1278_s29, %s1278_s29 }
  0x35   : > { %p1046_p5 = scmp.ne.s32.totalorder %s1278_s29, %s1045_s26  ;;  %p1054_p0 = scmp.lt.s32.totalorder %s1045_s26, %s1045_s26 }
  0x37   : > { %p1048_p7 = pnand %p1046_p5, %p1006_p13  ;;  %p1055_p1 = por %p1054_p0, %p1053_p12 }
  0x39   : > { %p1049_p9 = pneg %p1048_p7 }
  0x3b   : > { %p1056_p4 = pnand %p1055_p1, %p1049_p9 }
  0x3d   : > { %1059 = shalt.err (!%p1056_p4)
}
  0x3e   : > { %925 = dma.hbm_to_vmem [thread:$0]  (!%p1274_p11), %s1815_s2, 512, %s1278_s29, [#allocation6], %s1180_s11, %s1180_s11, %s1181_s18  }
  0x3f   : > { %s32_s19 = sadd.s32 1, %s1172_s16  ;;  %s41_s25 = sadd.s32 1, %s1164_s14 }
  0x40   : > { %p34_p13 = scmp.ge.s32.totalorder %s32_s19, 2  ;;  %p48_p6 = scmp.ne.s32.totalorder %s1164_s14, %s1160_s13 }
  0x41   : > { %p49_p10 = scmp.eq.s32.totalorder %s1176_s17, 0  ;;  %p936_p3 = scmp.lt.s32.totalorder %s1176_s17, 2 }
  0x42   : > { %s1891_s19 = smov (%p34_p13, %s32_s19), 0  ;;  %p1342_p7 = por %p1247_p2, %p48_p6 }
  0x43   : > { %p50_p5 = por %p49_p10, %p48_p6  ;;  %s36_s28 = ssub.s32 %s1172_s16, %s1891_s19 }
  0x44   : > { %s1828_s27 = scalar_select %p1342_p7, 1, 0 }
  0x45   : > { %s174_s30 = sand.u32 1, %s1164_s14   ;;  %p39_p9 = scmp.eq.s32.totalorder %s36_s28, 0 }
  0x46   : > { %s892_s29 = sshll.u32 %s174_s30, 5  ;;  %s905_s11 = sshll.u32 %s1172_s16, 9 }
  0x47   : > { %s1351_s18 = scalar_select %p39_p9, %s1164_s14, %s41_s25  }
  0x48   : > { %s1356_s6 = scalar_lea.hbm %s1813_s0, %s905_s11  ;;  %s178_s21 = scalar_lea.vmem [#allocation2], %s892_s29 }
  0x49   : > { %s188_s7 = sshll.u32 %s178_s21, 4  ;;  %p1360_p2 = pnand %p936_p3, %p50_p5  ;;  %s1364_s7 = int_to_ptr.vmem [resolvable:$true] %s188_s7 }
  0x4a   : > { %s175_s26 = scalar_lea.sflag [#allocation3], %s174_s30  ;;  %s1060_s9 = scalar_lea.hbm %s1356_s6, 512 }
  0x4b   : > { %p1061_p11 = scmp.ne.s32.totalorder %s1356_s6, %s1060_s9  ;;  %p1062_p12 = pneg %p1360_p2 }
  0x4c   : > { %s1065_s28 = scalar_lea.hbm %s1813_s0, 1024  ;;  %p1066_p4 = scmp.lt.u32.totalorder %s1356_s6, %s1813_s0 }
  0x4d   : > { %p1063_p0 = pnand %p1062_p12, %p1061_p11  ;;  %p1067_p13 = scmp.lt.u32.totalorder %s1065_s28, %s1060_s9 }
  0x4e   : > { %p1069_p10 = scmp.lt.u32.totalorder %s1060_s9, %s1356_s6 }
  0x4f   : > { %p1064_p1 = pneg %p1063_p0  ;;  %p1068_p6 = por %p1067_p13, %p1066_p4 }
  0x51   : > { %p1070_p3 = por %p1069_p10, %p1068_p6 }
  0x53   : > { %p1071_p5 = pnand %p1070_p3, %p1064_p1 }
  0x55   : > { %1074 = shalt.err (!%p1071_p5)
}
  0x56   : > { %s1075_s30 = scalar_lea.vmem %s1364_s7, 512  ;;  %s1182_s4 = smov [#allocation2]  }
  0x57   : > { %p1076_p9 = scmp.ne.s32.totalorder %s1364_s7, %s1075_s30  ;;  %s1080_s5 = sshll.u32 %s1182_s4, 4  ;;  %s1081_s5 = int_to_ptr.vmem [resolvable:$false] %s1080_s5 }
  0x58   : > { %s1082_s21 = scalar_lea.vmem %s1081_s5, 1024  ;;  %p1083_p7 = scmp.lt.s32.totalorder %s1364_s7, %s1081_s5 }
  0x59   : > { %p1078_p11 = pnand %p1076_p9, %p1062_p12  ;;  %p1084_p4 = scmp.lt.s32.totalorder %s1082_s21, %s1075_s30 }
  0x5b   : > { %p1079_p0 = pneg %p1078_p11  ;;  %p1085_p13 = por %p1084_p4, %p1083_p7 }
  0x5d   : > { %p1086_p6 = pnand %p1085_p13, %p1079_p0 }
  0x5f   : > { %1089 = shalt.err (!%p1086_p6)
}
  0x60   : > { %929 = dma.hbm_to_vmem [thread:$0]  (!%p1360_p2), %s1356_s6, 512, %s1364_s7, %s175_s26  }
  0x61   : > { %197 = sbr.rel (%p1263_p8) target bundleno = 313 (0x139), region = 32 }
  0x68   : > { %s1394_s9 = sand.u32 1, %s1160_s13   ;;  %p1830_p7 = scmp.ne.s32.totalorder %s1824_s22, 0 }
  0x69   : > { %s896_s10 = sshll.u32 %s1394_s9, 5  ;;  %s200_s25 = scalar_lea.sflag [#allocation3], %s1394_s9 }
  0x6a   : > { %s1398_s28 = scalar_lea.vmem [#allocation2], %s896_s10 }
  0x6b   : > { %1143 = dma.done.wait (%p1830_p7), %s200_s25, 512  }
  0x6c   : > { %1145 = vsyncadd (%p1830_p7), %s200_s25, 4294966784  ;;  %p1831_p2 = scmp.ne.s32.totalorder %s1822_s20, 0 }
  0x6e   : > { %1147 = dma.done.wait (%p1831_p2), [#allocation6], 1024  }
  0x6f   : > { %1149 = vsyncadd (%p1831_p2), [#allocation6], 4294966272  ;;  %v1183_v0 = vmov 1   ;;  %v1184_v1 = vmov 0   ;;  %v242_v2 = vld [vmem:[#allocation5 + $0x10] sm:$0xff]  ;;  %v240_v3 = vld [vmem:[#allocation5] sm:$0xff]  ;;  %v268_v11 = vlaneseq }
  0x70   : > { %998 = vset.pattern.permute.xlu0 %v1183_v0  ;;  %997 = vset.pattern.permute.xlu1 %v1184_v1  ;;  %v243_v4 = vld [vmem:[#allocation5 + $0x18] sm:$0xff]  ;;  %v241_v5 = vld [vmem:[#allocation5 + $0x8] sm:$0xff]  ;;  %v1185_v6 = vmov 2   ;;  %v676_v7 = vld [vmem:[#allocation7] sm:$0xff]  ;;  %s899_s20 = sshll.u32 %s1394_s9, 8  ;;  %s906_s24 = sshll.u32 %s1168_s15, 12 }
  0x71   : > { %256 = vperm.xlu1 %997, %v242_v2   ;;  %373 = vperm.xlu0 %998, %v240_v3   ;;  %v679_v8 = vld [vmem:[#allocation7 + $0x18] sm:$0xff]  ;;  %v677_v9 = vld [vmem:[#allocation7 + $0x8] sm:$0xff]  ;;  %v678_v10 = vld [vmem:[#allocation7 + $0x10] sm:$0xff]  ;;  %v269_v12 = vshrl.u32 %v268_v11, 7  ;;  %s1655_s22 = scalar_lea.vmem [#allocation8], %s899_s20  ;;  %s1754_s8 = scalar_lea.hbm %s1816_s3, %s906_s24 }
  0x72   : > { %v236_v15 = vld [vmem:[%s1398_s28] sm:$0x77]  ;;  %v237_v16 = vld [vmem:[%s1398_s28 + $0x8] sm:$0x77]  ;;  %v238_v17 = vld [vmem:[%s1398_s28 + $0x10] sm:$0x77] }
  0x73   : > { %v270_v13 = vsub.s32 0, %v269_v12  ;;  %v274_v14 = vsub.s32 4, %v269_v12  ;;  %v390_v18 = vsub.s32 1, %v269_v12  ;;  %v239_v19 = vld [vmem:[%s1398_s28 + $0x18] sm:$0x77]  ;;  %v394_v22 = vsub.s32 5, %v269_v12 }
  0x74   : > { %v542_v29 = vsub.s32 2, %v269_v12  ;;  %v546_v34 = vsub.s32 6, %v269_v12  ;;  %s780_s6 = sshll.u32 %s1655_s22, 4  ;;  %s765_s26 = scalar_lea.sflag [#allocation4], %s1394_s9  ;;  %s1756_s6 = int_to_ptr.vmem [resolvable:$true] %s780_s6 }
  0x75   : > { %261 = vperm.xlu1 %997, %v243_v4   ;;  %385 = vperm.xlu0 %998, %v243_v4   ;;  %v271_v20 = vrot.slane %v236_v15, %v270_v13  ;;  %v275_v21 = vrot.slane %v236_v15, %v274_v14  ;;  %v279_v23 = vrot.slane %v237_v16, %v270_v13  ;;  %s1090_s29 = scalar_lea.vmem %s1756_s6, 4096  ;;  %p1882_p12 = scmp.ne.s32.totalorder %s1828_s27, 0 }
  0x76   : > { %v283_v24 = vrot.slane %v237_v16, %v274_v14  ;;  %v287_v25 = vrot.slane %v238_v17, %v270_v13  ;;  %v291_v26 = vrot.slane %v238_v17, %v274_v14  ;;  %v295_v27 = vrot.slane %v239_v19, %v270_v13  ;;  %p1091_p8 = scmp.ne.s32.totalorder %s1756_s6, %s1090_s29  ;;  %s1186_s11 = smov [#allocation8]  }
  0x77   : > { %v299_v28 = vrot.slane %v239_v19, %v274_v14  ;;  %v391_v30 = vrot.slane %v236_v15, %v390_v18  ;;  %v1412_v31 = vrot.slane %v271_v20, %v270_v13  ;;  %v1414_v32 = vrot.slane %v275_v21, %v270_v13  ;;  %s1094_s30 = sshll.u32 %s1186_s11, 4  ;;  %s1095_s30 = int_to_ptr.vmem [resolvable:$false] %s1094_s30 }
  0x78   : > { %v395_v33 = vrot.slane %v236_v15, %v394_v22  ;;  %v1416_v35 = vrot.slane %v279_v23, %v270_v13  ;;  %v1418_v36 = vrot.slane %v283_v24, %v270_v13  ;;  %v1420_v37 = vrot.slane %v287_v25, %v270_v13  ;;  %p1092_p1 = pnand %p1091_p8, %p1882_p12  ;;  %s1096_s4 = scalar_lea.vmem %s1095_s30, 8192 }
  0x79   : > { %999 = vset.pattern.permute.xlu1 %v1183_v0  ;;  %1001 = vset.pattern.permute.xlu0 %v1185_v6  ;;  %v1422_v38 = vrot.slane %v291_v26, %v270_v13  ;;  %v1424_v39 = vrot.slane %v295_v27, %v270_v13  ;;  %v1426_v40 = vrot.slane %v299_v28, %v270_v13  ;;  %p1097_p3 = scmp.lt.s32.totalorder %s1756_s6, %s1095_s30  ;;  %p1098_p5 = scmp.lt.s32.totalorder %s1096_s4, %s1090_s29 }
  0x7a   : > { %377 = vperm.xlu1 %999, %v241_v5   ;;  %529 = vperm.xlu0 %1001, %v241_v5   ;;  %v399_v41 = vrot.slane %v237_v16, %v390_v18  ;;  %v403_v42 = vrot.slane %v237_v16, %v394_v22  ;;  %v407_v43 = vrot.slane %v238_v17, %v390_v18  ;;  %p1093_p10 = pneg %p1092_p1 }
  0x7b   : > { %v411_v44 = vrot.slane %v238_v17, %v394_v22  ;;  %v415_v45 = vrot.slane %v239_v19, %v390_v18  ;;  %v419_v46 = vrot.slane %v239_v19, %v394_v22  ;;  %v543_v47 = vrot.slane %v236_v15, %v542_v29  ;;  %p1099_p9 = por %p1098_p5, %p1097_p3 }
  0x7c   : > { %v547_v48 = vrot.slane %v236_v15, %v546_v34  ;;  %v551_v49 = vrot.slane %v237_v16, %v542_v29  ;;  %v559_v50 = vrot.slane %v238_v17, %v542_v29  ;;  %v555_v51 = vrot.slane %v237_v16, %v546_v34 }
  0x7d   : > { %v563_v52 = vrot.slane %v238_v17, %v546_v34  ;;  %v567_v53 = vrot.slane %v239_v19, %v542_v29  ;;  %v571_v54 = vrot.slane %v239_v19, %v546_v34  ;;  %v1428_v55 = vrot.slane %v391_v30, %v390_v18  ;;  %p1100_p11 = pnand %p1099_p9, %p1093_p10 }
  0x7e   : > { %381 = vperm.xlu1 %999, %v242_v2   ;;  %1002 = vset.pattern.permute.xlu0 %v1184_v1  ;;  %v1430_v56 = vrot.slane %v395_v33, %v390_v18  ;;  %v1432_v57 = vrot.slane %v399_v41, %v390_v18  ;;  %v1434_v58 = vrot.slane %v403_v42, %v390_v18 }
  0x7f   : > { %246 = vperm.xlu0 %1002, %v240_v3   ;;  %v1436_v59 = vrot.slane %v407_v43, %v390_v18  ;;  %v1438_v60 = vrot.slane %v411_v44, %v390_v18  ;;  %v1440_v61 = vrot.slane %v415_v45, %v390_v18  ;;  %v1442_v62 = vrot.slane %v419_v46, %v390_v18 }
  0x80   : > { %v1444_v63 = vrot.slane %v543_v47, %v542_v29  ;;  %v1446_v0 = vrot.slane %v547_v48, %v542_v29 }
  0x82   : > { %1000 = vset.pattern.permute.xlu1 %v1185_v6  ;;  %v1454_v6 = vrot.slane %v563_v52, %v542_v29 }
  0x83   : > { %525 = vperm.xlu1 %1000, %v240_v3   ;;  %251 = vperm.xlu0 %1002, %v241_v5   ;;  %v1452_v5 = vrot.slane %v555_v51, %v542_v29 }
  0x87   : > { %533 = vperm.xlu1 %1000, %v242_v2   ;;  %682 = vperm.xlu0 %1002, %v676_v7   ;;  %v1450_v2 = vrot.slane %v559_v50, %v542_v29  ;;  %v1456_v7 = vrot.slane %v567_v53, %v542_v29 }
  0x8b   : > { %537 = vperm.xlu1 %1000, %v243_v4   ;;  %697 = vperm.xlu0 %1002, %v679_v8   ;;  %v1458_v8 = vrot.slane %v571_v54, %v542_v29 }
  0x8f   : > { %1003 = vset.pattern.permute.xlu1 %v1184_v1  ;;  %v1448_v1 = vrot.slane %v551_v49, %v542_v29 }
  0x90   : > { %687 = vperm.xlu1 %1003, %v677_v9  }
  0x94   : > { %692 = vperm.xlu1 %1003, %v678_v10  }
  0xf0   : > { %v257_v3 = vpop.permute.xlu1 %256  ;;  %v374_v4 = vpop.permute.xlu0 %373 }
  0xf1   : > { %v1461_v9 = vmul.f32 %v1412_v31, %v257_v3  ;;  %v1464_v10 = vmul.f32 %v1414_v32, %v257_v3  ;;  %v1467_v11 = vmul.f32 %v1416_v35, %v257_v3  ;;  %v1470_v12 = vmul.f32 %v1418_v36, %v257_v3 }
  0xf2   : > { %v1473_v13 = vmul.f32 %v1420_v37, %v257_v3  ;;  %v1476_v14 = vmul.f32 %v1422_v38, %v257_v3  ;;  %v1479_v15 = vmul.f32 %v1424_v39, %v257_v3  ;;  %v1482_v16 = vmul.f32 %v1426_v40, %v257_v3 }
  0xf3   : > { %1832 = vst [vmem:[#allocation12_spill] sm:$0xff] %v1461_v9  ;;  %1833 = vst [vmem:[#allocation13_spill] sm:$0xff] %v1464_v10  ;;  %v1485_v17 = vmul.f32 %v1428_v55, %v374_v4  ;;  %v1488_v18 = vmul.f32 %v1430_v56, %v374_v4  ;;  %v1491_v19 = vmul.f32 %v1432_v57, %v374_v4 }
  0xf4   : > { %1834 = vst [vmem:[#allocation14_spill] sm:$0xff] %v1467_v11  ;;  %1835 = vst [vmem:[#allocation15_spill] sm:$0xff] %v1470_v12  ;;  %v1494_v20 = vmul.f32 %v1434_v58, %v374_v4  ;;  %v1497_v21 = vmul.f32 %v1436_v59, %v374_v4  ;;  %v1500_v22 = vmul.f32 %v1438_v60, %v374_v4  ;;  %v262_v25 = vpop.permute.xlu1 %261  ;;  %v386_v26 = vpop.permute.xlu0 %385 }
  0xf5   : > { %1836 = vst [vmem:[#allocation16_spill] sm:$0xff] %v1473_v13  ;;  %1837 = vst [vmem:[#allocation17_spill] sm:$0xff] %v1476_v14  ;;  %v1503_v23 = vmul.f32 %v1440_v61, %v374_v4  ;;  %v1506_v24 = vmul.f32 %v1442_v62, %v374_v4  ;;  %v364_v27 = vmul.f32 %v1412_v31, %v262_v25 }
  0xf6   : > { %1838 = vst [vmem:[#allocation18_spill] sm:$0xff] %v1479_v15  ;;  %1839 = vst [vmem:[#allocation19_spill] sm:$0xff] %v1482_v16  ;;  %v365_v28 = vmul.f32 %v1414_v32, %v262_v25  ;;  %v366_v29 = vmul.f32 %v1416_v35, %v262_v25  ;;  %v367_v30 = vmul.f32 %v1418_v36, %v262_v25 }
  0xf7   : > { %v1513_v33 = vmul.f32 %v1420_v37, %v262_v25  ;;  %v1516_v34 = vmul.f32 %v1422_v38, %v262_v25  ;;  %v1519_v41 = vmul.f32 %v1424_v39, %v262_v25  ;;  %v1522_v42 = vmul.f32 %v1426_v40, %v262_v25 }
  0xf8   : > { %v484_v43 = vmul.f32 %v1428_v55, %v386_v26  ;;  %v485_v44 = vmul.f32 %v1430_v56, %v386_v26  ;;  %v486_v45 = vmul.f32 %v1432_v57, %v386_v26  ;;  %v487_v46 = vmul.f32 %v1434_v58, %v386_v26 }
  0xf9   : > { %v1529_v47 = vmul.f32 %v1436_v59, %v386_v26  ;;  %v1532_v48 = vmul.f32 %v1438_v60, %v386_v26  ;;  %v1535_v49 = vmul.f32 %v1440_v61, %v386_v26  ;;  %v1538_v50 = vmul.f32 %v1442_v62, %v386_v26  ;;  %v378_v51 = vpop.permute.xlu1 %377  ;;  %v530_v52 = vpop.permute.xlu0 %529 }
  0xfa   : > { %v1540_v53 = vadd.f32 %v484_v43, %v364_v27  ;;  %v1542_v54 = vadd.f32 %v485_v44, %v365_v28  ;;  %v1544_v3 = vadd.f32 %v486_v45, %v366_v29  ;;  %v1546_v4 = vadd.f32 %v487_v46, %v367_v30 }
  0xfb   : > { %v468_v25 = vmul.f32 %v1428_v55, %v378_v51  ;;  %v469_v16 = vmul.f32 %v1430_v56, %v378_v51  ;;  %v470_v15 = vmul.f32 %v1432_v57, %v378_v51  ;;  %v471_v14 = vmul.f32 %v1434_v58, %v378_v51 }
  0xfc   : > { %v472_v26 = vmul.f32 %v1436_v59, %v378_v51  ;;  %v473_v13 = vmul.f32 %v1438_v60, %v378_v51  ;;  %v474_v27 = vmul.f32 %v1440_v61, %v378_v51  ;;  %v475_v28 = vmul.f32 %v1442_v62, %v378_v51 }
  0xfd   : > { %v1557_v29 = vmul.f32 %v1444_v63, %v530_v52  ;;  %v1560_v30 = vmul.f32 %v1446_v0, %v530_v52  ;;  %v1563_v43 = vmul.f32 %v1448_v1, %v530_v52  ;;  %v1566_v44 = vmul.f32 %v1452_v5, %v530_v52  ;;  %v382_v11 = vpop.permute.xlu1 %381 }
  0xfe   : > { %v1569_v45 = vmul.f32 %v1450_v2, %v530_v52  ;;  %v1572_v46 = vmul.f32 %v1454_v6, %v530_v52  ;;  %v1575_v51 = vmul.f32 %v1456_v7, %v530_v52  ;;  %v1578_v12 = vmul.f32 %v1458_v8, %v530_v52 }
  0xff   : > { %1840 = vst [vmem:[#allocation20_spill] sm:$0xff] %v1557_v29  ;;  %1841 = vst [vmem:[#allocation21_spill] sm:$0xff] %v1560_v30  ;;  %v1581_v10 = vmul.f32 %v1428_v55, %v382_v11  ;;  %v1584_v9 = vmul.f32 %v1430_v56, %v382_v11  ;;  %v1596_v52 = vmul.f32 %v1438_v60, %v382_v11 }
 0x100   : > { %1842 = vst [vmem:[#allocation22_spill] sm:$0xff] %v1563_v43  ;;  %1843 = vst [vmem:[#allocation23_spill] sm:$0xff] %v1566_v44  ;;  %v1587_v44 = vmul.f32 %v1432_v57, %v382_v11  ;;  %v1593_v43 = vmul.f32 %v1436_v59, %v382_v11  ;;  %v1602_v55 = vmul.f32 %v1442_v62, %v382_v11 }
 0x101   : > { %1844 = vst [vmem:[#allocation24_spill] sm:$0xff] %v1569_v45  ;;  %1845 = vst [vmem:[#allocation25_spill] sm:$0xff] %v1572_v46  ;;  %v1590_v45 = vmul.f32 %v1434_v58, %v382_v11  ;;  %v247_v46 = vpop.permute.xlu0 %246 }
 0x102   : > { %1846 = vst [vmem:[#allocation26_spill] sm:$0xff] %v1575_v51  ;;  %1847 = vst [vmem:[#allocation27_spill] sm:$0xff] %v1578_v12  ;;  %v1599_v12 = vmul.f32 %v1440_v61, %v382_v11  ;;  %v340_v56 = vmul.f32 %v1412_v31, %v247_v46  ;;  %v341_v57 = vmul.f32 %v1414_v32, %v247_v46 }
 0x103   : > { %1848 = vst [vmem:[#allocation28_spill] sm:$0xff] %v1581_v10  ;;  %1849 = vst [vmem:[#allocation29_spill] sm:$0xff] %v1584_v9  ;;  %v342_v58 = vmul.f32 %v1416_v35, %v247_v46  ;;  %v344_v59 = vmul.f32 %v1420_v37, %v247_v46  ;;  %v346_v60 = vmul.f32 %v1424_v39, %v247_v46 }
 0x104   : > { %1850 = vst [vmem:[#allocation30_spill] sm:$0xff] %v1587_v44  ;;  %1851 = vst [vmem:[#allocation31_spill] sm:$0xff] %v1590_v45  ;;  %v343_v45 = vmul.f32 %v1418_v36, %v247_v46  ;;  %v347_v61 = vmul.f32 %v1426_v40, %v247_v46  ;;  %v493_v62 = vadd.f32 %v1488_v18, %v341_v57 }
 0x105   : > { %1852 = vst [vmem:[#allocation32_spill] sm:$0xff] %v1593_v43  ;;  %1853 = vst [vmem:[#allocation33_spill] sm:$0xff] %v1596_v52  ;;  %v345_v43 = vmul.f32 %v1422_v38, %v247_v46  ;;  %v494_v11 = vadd.f32 %v1491_v19, %v342_v58  ;;  %v526_v52 = vpop.permute.xlu1 %525  ;;  %v496_v44 = vadd.f32 %v1497_v21, %v344_v59  ;;  %v252_v30 = vpop.permute.xlu0 %251 }
 0x106   : > { %1854 = vst [vmem:[#allocation34_spill] sm:$0xff] %v1599_v12  ;;  %1855 = vst [vmem:[#allocation35_spill] sm:$0xff] %v1602_v55  ;;  %v492_v12 = vadd.f32 %v1485_v17, %v340_v56  ;;  %v495_v55 = vadd.f32 %v1494_v20, %v343_v45  ;;  %v498_v10 = vadd.f32 %v1503_v23, %v346_v60 }
 0x107   : > { %v497_v9 = vadd.f32 %v1500_v22, %v345_v43  ;;  %v499_v51 = vadd.f32 %v1506_v24, %v347_v61  ;;  %v612_v46 = vmul.f32 %v1444_v63, %v526_v52  ;;  %v613_v17 = vmul.f32 %v1446_v0, %v526_v52 }
 0x108   : > { %v614_v18 = vmul.f32 %v1448_v1, %v526_v52  ;;  %v615_v19 = vmul.f32 %v1452_v5, %v526_v52  ;;  %v616_v20 = vmul.f32 %v1450_v2, %v526_v52  ;;  %v617_v45 = vmul.f32 %v1454_v6, %v526_v52 }
 0x109   : > { %v618_v21 = vmul.f32 %v1456_v7, %v526_v52  ;;  %v619_v22 = vmul.f32 %v1458_v8, %v526_v52  ;;  %v348_v23 = vmul.f32 %v1412_v31, %v252_v30  ;;  %v349_v24 = vmul.f32 %v1414_v32, %v252_v30  ;;  %v1632_v57 = vpop.permute.xlu1 %533 }
 0x10a   : > { %v350_v43 = vmul.f32 %v1416_v35, %v252_v30  ;;  %v351_v56 = vmul.f32 %v1418_v36, %v252_v30  ;;  %1856 = vst [vmem:[#allocation36_spill] sm:$0xff] %v1632_v57  ;;  %v352_v58 = vmul.f32 %v1420_v37, %v252_v30  ;;  %v353_v59 = vmul.f32 %v1422_v38, %v252_v30 }
 0x10b   : > { %v354_v60 = vmul.f32 %v1424_v39, %v252_v30  ;;  %v355_v61 = vmul.f32 %v1426_v40, %v252_v30  ;;  %v1638_v29 = vadd.f32 %v468_v25, %v348_v23  ;;  %v1640_v52 = vadd.f32 %v469_v16, %v349_v24  ;;  %v683_v39 = vpop.permute.xlu0 %682 }
 0x10c   : > { %v1642_v31 = vadd.f32 %v470_v15, %v350_v43  ;;  %v1644_v32 = vadd.f32 %v471_v14, %v351_v56  ;;  %v1647_v35 = vadd.f32 %v472_v26, %v352_v58  ;;  %v1649_v36 = vadd.f32 %v473_v13, %v353_v59 }
 0x10d   : > { %v1651_v37 = vadd.f32 %v474_v27, %v354_v60  ;;  %v1653_v38 = vadd.f32 %v475_v28, %v355_v61  ;;  %v644_v57 = vadd.f32 %v612_v46, %v492_v12  ;;  %v645_v40 = vadd.f32 %v613_v17, %v493_v62  ;;  %v538_v58 = vpop.permute.xlu1 %537  ;;  %v1857_v61 = vld [vmem:[#allocation20_spill] sm:$0xff] }
 0x10e   : > { %v646_v25 = vadd.f32 %v614_v18, %v494_v11  ;;  %v647_v30 = vadd.f32 %v615_v19, %v495_v55  ;;  %v648_v16 = vadd.f32 %v616_v20, %v496_v44  ;;  %v649_v23 = vadd.f32 %v617_v45, %v497_v9 }
 0x10f   : > { %v650_v15 = vadd.f32 %v618_v21, %v498_v10  ;;  %v651_v24 = vadd.f32 %v619_v22, %v499_v51  ;;  %v700_v14 = vadd.f32 %v683_v39, %v644_v57  ;;  %v701_v43 = vadd.f32 %v683_v39, %v645_v40  ;;  %v698_v11 = vpop.permute.xlu0 %697  ;;  %v1858_v40 = vld [vmem:[#allocation21_spill] sm:$0xff] }
 0x110   : > { %v702_v56 = vadd.f32 %v683_v39, %v646_v25  ;;  %v703_v26 = vadd.f32 %v683_v39, %v647_v30  ;;  %v704_v13 = vadd.f32 %v683_v39, %v648_v16  ;;  %v705_v59 = vadd.f32 %v683_v39, %v649_v23  ;;  %v1859_v30 = vld [vmem:[#allocation22_spill] sm:$0xff]  ;;  %v1860_v23 = vld [vmem:[#allocation23_spill] sm:$0xff] }
 0x111   : > { %v706_v27 = vadd.f32 %v683_v39, %v650_v15  ;;  %v707_v60 = vadd.f32 %v683_v39, %v651_v24  ;;  %732 = vst [vmem:[%s1655_s22] sm:$0xff] %v700_v14  ;;  %733 = vst [vmem:[%s1655_s22 + $0x8] sm:$0xff] %v701_v43  ;;  %v520_v9 = vadd.f32 %v1529_v47, %v1513_v33  ;;  %v688_v57 = vpop.permute.xlu1 %687  ;;  %v1861_v24 = vld [vmem:[#allocation24_spill] sm:$0xff]  ;;  %v1862_v14 = vld [vmem:[#allocation25_spill] sm:$0xff] }
 0x112   : > { %734 = vst [vmem:[%s1655_s22 + $0x10] sm:$0xff] %v702_v56  ;;  %735 = vst [vmem:[%s1655_s22 + $0x18] sm:$0xff] %v703_v26  ;;  %v521_v10 = vadd.f32 %v1532_v48, %v1516_v34  ;;  %v522_v12 = vadd.f32 %v1535_v49, %v1519_v41  ;;  %v523_v28 = vadd.f32 %v1538_v50, %v1522_v42  ;;  %v1863_v43 = vld [vmem:[#allocation26_spill] sm:$0xff]  ;;  %v1864_v56 = vld [vmem:[#allocation27_spill] sm:$0xff] }
 0x113   : > { %736 = vst [vmem:[%s1655_s22 + $0x20] sm:$0xff] %v704_v13  ;;  %737 = vst [vmem:[%s1655_s22 + $0x28] sm:$0xff] %v705_v59  ;;  %v636_v44 = vmul.f32 %v1444_v63, %v538_v58  ;;  %v637_v51 = vmul.f32 %v1446_v0, %v538_v58  ;;  %v638_v55 = vmul.f32 %v1448_v1, %v538_v58 }
 0x114   : > { %738 = vst [vmem:[%s1655_s22 + $0x30] sm:$0xff] %v706_v27  ;;  %739 = vst [vmem:[%s1655_s22 + $0x38] sm:$0xff] %v707_v60  ;;  %v639_v33 = vmul.f32 %v1452_v5, %v538_v58  ;;  %v640_v34 = vmul.f32 %v1450_v2, %v538_v58  ;;  %v641_v47 = vmul.f32 %v1454_v6, %v538_v58 }
 0x115   : > { %v642_v41 = vmul.f32 %v1456_v7, %v538_v58  ;;  %v643_v42 = vmul.f32 %v1458_v8, %v538_v58  ;;  %v668_v48 = vadd.f32 %v636_v44, %v1540_v53  ;;  %v669_v49 = vadd.f32 %v637_v51, %v1542_v54  ;;  %v1869_v44 = vld [vmem:[#allocation14_spill] sm:$0xff] }
 0x116   : > { %v670_v50 = vadd.f32 %v638_v55, %v1544_v3  ;;  %v671_v62 = vadd.f32 %v639_v33, %v1546_v4  ;;  %v672_v46 = vadd.f32 %v640_v34, %v520_v9  ;;  %v673_v17 = vadd.f32 %v641_v47, %v521_v10  ;;  %v1870_v51 = vld [vmem:[#allocation30_spill] sm:$0xff]  ;;  %v1871_v33 = vld [vmem:[#allocation15_spill] sm:$0xff] }
 0x117   : > { %v674_v18 = vadd.f32 %v642_v41, %v522_v12  ;;  %v675_v19 = vadd.f32 %v643_v42, %v523_v28  ;;  %v724_v20 = vadd.f32 %v698_v11, %v668_v48  ;;  %v725_v45 = vadd.f32 %v698_v11, %v669_v49  ;;  %v1868_v12 = vld [vmem:[#allocation29_spill] sm:$0xff]  ;;  %v1872_v34 = vld [vmem:[#allocation31_spill] sm:$0xff]  ;;  %v1873_v41 = vld [vmem:[#allocation16_spill] sm:$0xff] }
 0x118   : > { %v726_v21 = vadd.f32 %v698_v11, %v670_v50  ;;  %v727_v53 = vadd.f32 %v698_v11, %v671_v62  ;;  %v728_v54 = vadd.f32 %v698_v11, %v672_v46  ;;  %v729_v3 = vadd.f32 %v698_v11, %v673_v17  ;;  %v1874_v42 = vld [vmem:[#allocation32_spill] sm:$0xff]  ;;  %v1875_v49 = vld [vmem:[#allocation17_spill] sm:$0xff]  ;;  %v1878_v46 = vld [vmem:[#allocation34_spill] sm:$0xff] }
 0x119   : > { %v730_v22 = vadd.f32 %v698_v11, %v674_v18  ;;  %v731_v4 = vadd.f32 %v698_v11, %v675_v19  ;;  %756 = vst [vmem:[%s1655_s22 + $0xc0] sm:$0xff] %v724_v20  ;;  %757 = vst [vmem:[%s1655_s22 + $0xc8] sm:$0xff] %v725_v45  ;;  %v652_v39 = vadd.f32 %v1857_v61, %v1638_v29  ;;  %v1876_v50 = vld [vmem:[#allocation33_spill] sm:$0xff]  ;;  %v1877_v11 = vld [vmem:[#allocation18_spill] sm:$0xff] }
 0x11a   : > { %758 = vst [vmem:[%s1655_s22 + $0xd0] sm:$0xff] %v726_v21  ;;  %759 = vst [vmem:[%s1655_s22 + $0xd8] sm:$0xff] %v727_v53  ;;  %v653_v25 = vadd.f32 %v1858_v40, %v1640_v52  ;;  %v654_v16 = vadd.f32 %v1859_v30, %v1642_v31  ;;  %v655_v15 = vadd.f32 %v1860_v23, %v1644_v32  ;;  %v1879_v18 = vld [vmem:[#allocation19_spill] sm:$0xff]  ;;  %v1881_v45 = vld [vmem:[#allocation36_spill] sm:$0xff] }
 0x11b   : > { %760 = vst [vmem:[%s1655_s22 + $0xe0] sm:$0xff] %v728_v54  ;;  %761 = vst [vmem:[%s1655_s22 + $0xe8] sm:$0xff] %v729_v3  ;;  %v656_v29 = vadd.f32 %v1861_v24, %v1647_v35  ;;  %v657_v52 = vadd.f32 %v1862_v14, %v1649_v36  ;;  %v658_v31 = vadd.f32 %v1863_v43, %v1651_v37  ;;  %v1865_v36 = vld [vmem:[#allocation12_spill] sm:$0xff]  ;;  %v1880_v19 = vld [vmem:[#allocation35_spill] sm:$0xff] }
 0x11c   : > { %762 = vst [vmem:[%s1655_s22 + $0xf0] sm:$0xff] %v730_v22  ;;  %763 = vst [vmem:[%s1655_s22 + $0xf8] sm:$0xff] %v731_v4  ;;  %v659_v32 = vadd.f32 %v1864_v56, %v1653_v38  ;;  %v708_v26 = vadd.f32 %v688_v57, %v652_v39  ;;  %v709_v58 = vadd.f32 %v688_v57, %v653_v25  ;;  %v1866_v37 = vld [vmem:[#allocation28_spill] sm:$0xff]  ;;  %v1867_v38 = vld [vmem:[#allocation13_spill] sm:$0xff]  ;;  %v693_v22 = vpop.permute.xlu1 %692 }
 0x11d   : > { %v710_v13 = vadd.f32 %v688_v57, %v654_v16  ;;  %v711_v59 = vadd.f32 %v688_v57, %v655_v15  ;;  %v712_v27 = vadd.f32 %v688_v57, %v656_v29  ;;  %v713_v60 = vadd.f32 %v688_v57, %v657_v52 }
 0x11e   : > { %v714_v35 = vadd.f32 %v688_v57, %v658_v31  ;;  %v715_v9 = vadd.f32 %v688_v57, %v659_v32  ;;  %740 = vst [vmem:[%s1655_s22 + $0x40] sm:$0xff] %v708_v26  ;;  %741 = vst [vmem:[%s1655_s22 + $0x48] sm:$0xff] %v709_v58  ;;  %v508_v10 = vadd.f32 %v1866_v37, %v1865_v36 }
 0x11f   : > { %742 = vst [vmem:[%s1655_s22 + $0x50] sm:$0xff] %v710_v13  ;;  %743 = vst [vmem:[%s1655_s22 + $0x58] sm:$0xff] %v711_v59  ;;  %v509_v28 = vadd.f32 %v1868_v12, %v1867_v38  ;;  %v510_v55 = vadd.f32 %v1870_v51, %v1869_v44  ;;  %v511_v47 = vadd.f32 %v1872_v34, %v1871_v33 }
 0x120   : > { %744 = vst [vmem:[%s1655_s22 + $0x60] sm:$0xff] %v712_v27  ;;  %745 = vst [vmem:[%s1655_s22 + $0x68] sm:$0xff] %v713_v60  ;;  %v512_v48 = vadd.f32 %v1874_v42, %v1873_v41  ;;  %v513_v62 = vadd.f32 %v1876_v50, %v1875_v49  ;;  %v514_v17 = vadd.f32 %v1878_v46, %v1877_v11 }
 0x121   : > { %746 = vst [vmem:[%s1655_s22 + $0x70] sm:$0xff] %v714_v35  ;;  %747 = vst [vmem:[%s1655_s22 + $0x78] sm:$0xff] %v715_v9  ;;  %v515_v20 = vadd.f32 %v1880_v19, %v1879_v18  ;;  %v628_v21 = vmul.f32 %v1444_v63, %v1881_v45  ;;  %v629_v53 = vmul.f32 %v1446_v0, %v1881_v45 }
 0x122   : > { %v630_v54 = vmul.f32 %v1448_v1, %v1881_v45  ;;  %v631_v3 = vmul.f32 %v1452_v5, %v1881_v45  ;;  %v632_v4 = vmul.f32 %v1450_v2, %v1881_v45  ;;  %v633_v57 = vmul.f32 %v1454_v6, %v1881_v45 }
 0x123   : > { %v634_v61 = vmul.f32 %v1456_v7, %v1881_v45  ;;  %v635_v63 = vmul.f32 %v1458_v8, %v1881_v45  ;;  %v660_v0 = vadd.f32 %v628_v21, %v508_v10  ;;  %v661_v1 = vadd.f32 %v629_v53, %v509_v28 }
 0x124   : > { %v662_v39 = vadd.f32 %v630_v54, %v510_v55  ;;  %v663_v5 = vadd.f32 %v631_v3, %v511_v47  ;;  %v664_v40 = vadd.f32 %v632_v4, %v512_v48  ;;  %v665_v2 = vadd.f32 %v633_v57, %v513_v62 }
 0x125   : > { %v666_v25 = vadd.f32 %v634_v61, %v514_v17  ;;  %v667_v6 = vadd.f32 %v635_v63, %v515_v20  ;;  %v716_v7 = vadd.f32 %v693_v22, %v660_v0  ;;  %v717_v30 = vadd.f32 %v693_v22, %v661_v1 }
 0x126   : > { %v718_v8 = vadd.f32 %v693_v22, %v662_v39  ;;  %v719_v16 = vadd.f32 %v693_v22, %v663_v5  ;;  %v720_v23 = vadd.f32 %v693_v22, %v664_v40  ;;  %v721_v15 = vadd.f32 %v693_v22, %v665_v2 }
 0x127   : > { %v722_v24 = vadd.f32 %v693_v22, %v666_v25  ;;  %v723_v29 = vadd.f32 %v693_v22, %v667_v6  ;;  %748 = vst [vmem:[%s1655_s22 + $0x80] sm:$0xff] %v716_v7  ;;  %749 = vst [vmem:[%s1655_s22 + $0x88] sm:$0xff] %v717_v30 }
 0x128   : > { %750 = vst [vmem:[%s1655_s22 + $0x90] sm:$0xff] %v718_v8  ;;  %751 = vst [vmem:[%s1655_s22 + $0x98] sm:$0xff] %v719_v16 }
 0x129   : > { %752 = vst [vmem:[%s1655_s22 + $0xa0] sm:$0xff] %v720_v23  ;;  %753 = vst [vmem:[%s1655_s22 + $0xa8] sm:$0xff] %v721_v15 }
 0x12a   : > { %754 = vst [vmem:[%s1655_s22 + $0xb0] sm:$0xff] %v722_v24  ;;  %755 = vst [vmem:[%s1655_s22 + $0xb8] sm:$0xff] %v723_v29 }
 0x12b   : > { %1103 = shalt.err (!%p1100_p11)
}
 0x12c   : > { %s1104_s5 = scalar_lea.hbm %s1754_s8, 4096  ;;  %s1108_s25 = scalar_lea.hbm %s1816_s3, 8192 }
 0x12d   : > { %p1105_p0 = scmp.ne.s32.totalorder %s1754_s8, %s1104_s5  ;;  %p1109_p6 = scmp.lt.u32.totalorder %s1754_s8, %s1816_s3 }
 0x12e   : > { %p1110_p7 = scmp.lt.u32.totalorder %s1108_s25, %s1104_s5  ;;  %p1112_p8 = scmp.lt.u32.totalorder %s1104_s5, %s1754_s8 }
 0x12f   : > { %p1106_p4 = pnand %p1105_p0, %p1882_p12 }
 0x130   : > { %p1111_p2 = por %p1110_p7, %p1109_p6 }
 0x131   : > { %p1107_p13 = pneg %p1106_p4 }
 0x132   : > { %p1113_p1 = por %p1112_p8, %p1111_p2 }
 0x134   : > { %p1114_p10 = pnand %p1113_p1, %p1107_p13 }
 0x136   : > { %1117 = shalt.err (!%p1114_p10)
}
 0x137   : > { %s1187_s22 = smov 1024   ;;  %s1188_s24 = smov 64  }
 0x138   : > { %917 = dma.vmem_to_hbm [thread:$0]  (%p1882_p12), %s1756_s6, 4096, %s1754_s8, %s765_s26, %s1187_s22, %s1187_s22, %s1188_s24  }
 0x139 PF: > { %s795_s15 = sand.u32 1, %s1156_s12   ;;  %p1883_p3 = scmp.ne.s32.totalorder %s1825_s23, 0 }
 0x13a   : > { %p1884_p5 = scmp.ge.s32.totalorder %s1176_s17, 2  ;;  %s796_s7 = scalar_lea.sflag [#allocation4], %s795_s15 }
 0x13c   : > { %p931_p9 = pnand %p1884_p5, %p1883_p3 }
 0x13e   : > { %1151 = dma.done.wait (!%p931_p9), %s796_s7, 4096  }
 0x13f   : > { %1153 = vsyncadd (!%p931_p9), %s796_s7, 4294963200  ;;  %s20_s17 = sadd.s32 1, %s1176_s17   ;;  %s1885_s12 = smov %s1160_s13 }
 0x140   : > { %p17_p11 = scmp.ge.s32.totalorder %s20_s17, 4   ;;  %s1886_s13 = smov %s1164_s14 }
 0x141   : > { %s1887_s14 = smov %s1351_s18  ;;  %s1888_s15 = smov %s1172_s16 }
 0x142   : > { %s1889_s16 = smov %s1891_s19  ;;  %19 = sbr.rel (!%p17_p11) target bundleno = 7 (0x7), region = 85 }
 0x149   :  { %801 = vsyncpa [#allocation3], 1 }
 0x14a   :  { %803 = vsyncpa [#allocation3 + $0x1], 1 }
 0x14b   :  { %804 = vsyncpa [#allocation6], 1 }
 0x14c   :  { %805 = vsyncpa [#allocation4], 1 }
 0x14d   :  { %807 = vsyncpa [#allocation4 + $0x1], 1 }

</bundles_post_ra>
